<compile_context>
chip_gen: v6e
topology: v6e:2x2x1
jax: 0.10.0
libtpu: 0.0.40
codegen_flags: <defaults>
</compile_context>

<pallas_src>
import math

import jax
import jax.numpy as jnp
from jax.experimental import pallas as pl
from jax.experimental.pallas import tpu as pltpu


# ----------------------------------------------------------------------------
# Pallas kernel: fused [embedding gather -> Linear -> Swish -> Linear]
# (the sinusoidal table is already folded into W1 — see wrapper).
# ----------------------------------------------------------------------------
def _time_embed_kernel(t_ref, w1_ref, b1_ref, w2_ref, b2_ref, out_ref):
    bm = t_ref.shape[0]
    T = w1_ref.shape[0]
    cdt = w1_ref.dtype          # MXU operand dtype (float32 or bfloat16)

    # Fused gather + Linear1: one_hot(t) @ (table @ W1) on the MXU.
    # one_hot values (0/1) are exactly representable in bf16, so the cast is exact.
    t_vals = t_ref[...]                                        # [bm, 1] int32
    pos = jax.lax.broadcasted_iota(jnp.int32, (bm, T), 1)      # [bm, T]
    onehot = (pos == t_vals).astype(cdt)                       # [bm, T]
    h = jnp.dot(onehot, w1_ref[...],
                preferred_element_type=jnp.float32) + b1_ref[...]   # [bm, dim_pad]

    # Swish: x * sigmoid(x) with sigmoid(x) = 0.5 * (tanh(x/2) + 1).
    # Single EUP push, numerically stable for any |x| (no exp overflow).
    h = h * (0.5 * jnp.tanh(0.5 * h) + 0.5)

    # Linear2 (lane-dense: dim_pad is a multiple of 128 -> unmasked stores).
    y = jnp.dot(h.astype(cdt), w2_ref[...],
                preferred_element_type=jnp.float32) + b2_ref[...]
    out_ref[...] = y.astype(out_ref.dtype)


def _pick_bm(B):
    """Batch block size: the whole batch when tiny, otherwise a multiple of 8
    dividing B, capped at 128 and chosen so the grid has >= 2 steps.  This lets
    the 'parallel' axis shard across v7x's two TensorCores and enables
    DMA<->compute pipelining on all generations."""
    if B < 16:
        return B
    cap = min(128, B // 2)
    for bm in range(cap - cap % 8, 0, -8):
        if B % bm == 0:
            return bm
    return B           # no multiple-of-8 divisor: keep a single full block


def time_embedding_forward(t, fused_w1, b1_p, w2_p, b2_p, dim):
    """t: [B] int timesteps.  fused_w1: [T, dim_pad] = table @ W1 (zero-padded
    columns).  Returns [B, dim] float32."""
    B = int(t.shape[0])
    T, dim_pad = fused_w1.shape

    bm = _pick_bm(B)
    grid = (B // bm,)

    # Clamp out-of-range timesteps (jnp.take semantics) instead of silently
    # returning swish(b1) @ W2 + b2 from an all-zero one-hot row.
    t2d = jnp.clip(t.astype(jnp.int32), 0, T - 1).reshape(B, 1)

    # Cost estimate for the fused single-matmul-chain shapes.
    wbytes = jnp.dtype(fused_w1.dtype).itemsize
    flops = 2 * B * (T * dim_pad + dim_pad * dim_pad)
    bytes_accessed = (4 * B                          # t
                      + wbytes * T * dim_pad         # fused table @ W1
                      + wbytes * dim_pad * dim_pad   # W2
                      + 4 * 2 * dim_pad              # biases
                      + 4 * B * dim_pad)             # output
    cost = pl.CostEstimate(flops=flops, transcendentals=B * dim_pad,
                           bytes_accessed=bytes_accessed)

    # Raise the scoped-VMEM limit only when the (worst-case double-buffered)
    # weights outgrow v5e's 16 MiB default; cap below v7x's 64 MiB physical.
    weight_vmem = wbytes * (T * dim_pad + dim_pad * dim_pad) + 4 * 2 * dim_pad
    io_vmem = 2 * (4 * bm + 4 * bm * dim_pad)
    vmem_need = 2 * weight_vmem + io_vmem
    ckw = {"dimension_semantics": ("parallel",)}
    if vmem_need > (14 << 20):
        ckw["vmem_limit_bytes"] = int(min(vmem_need + (4 << 20), 60 << 20))
    compiler_params = pltpu.CompilerParams(**ckw)

    def build(single_buffer):
        if single_buffer:
            # Constant-index weight blocks never change across the grid; a
            # single buffer halves their VMEM footprint.
            const = lambda shape: pl.BlockSpec(
                shape, lambda i: (0,) * len(shape),
                pipeline_mode=pl.Buffered(1))
        else:
            const = lambda shape: pl.BlockSpec(shape, lambda i: (0,) * len(shape))
        return pl.pallas_call(
            _time_embed_kernel,
            out_shape=jax.ShapeDtypeStruct((B, dim_pad), jnp.float32),
            grid=grid,
            in_specs=[
                pl.BlockSpec((bm, 1), lambda i: (i, 0)),   # t
                const((T, dim_pad)),                       # fused table @ W1
                const((1, dim_pad)),                       # b1
                const((dim_pad, dim_pad)),                 # W2
                const((1, dim_pad)),                       # b2
            ],
            out_specs=pl.BlockSpec((bm, dim_pad), lambda i: (i, 0)),
            compiler_params=compiler_params,
            cost_estimate=cost,
        )

    try:
        out_p = build(True)(t2d, fused_w1, b1_p, w2_p, b2_p)
    except Exception:
        # pl.Buffered(1) not supported by this jax version -> default pipelining.
        out_p = build(False)(t2d, fused_w1, b1_p, w2_p, b2_p)

    return out_p[:, :dim] if dim_pad != dim else out_p


# ----------------------------------------------------------------------------
# Parameter / table construction (matches the PyTorch __init__ layout:
# interleaved sin/cos via stack(..., dim=-1).view(T, d_model)).
# ----------------------------------------------------------------------------
def make_sinusoidal_table(T, d_model):
    assert d_model % 2 == 0
    e = jnp.arange(0, d_model, 2, dtype=jnp.float32) / d_model * math.log(10000.0)
    e = jnp.exp(-e)                                              # [d_model//2]
    pos = jnp.arange(T, dtype=jnp.float32)                       # [T]
    freqs = pos[:, None] * e[None, :]                            # [T, d_model//2]
    table = jnp.stack([jnp.sin(freqs), jnp.cos(freqs)], axis=-1) # [T, d_model//2, 2]
    return table.reshape(T, d_model)                             # interleaved sin/cos


def init_linear(key, fan_in, fan_out):
    """Mimics torch.nn.Linear default init (uniform +-1/sqrt(fan_in)); weight
    stored as [fan_in, fan_out] so the kernel computes x @ W + b."""
    kw, kb = jax.random.split(key)
    bound = 1.0 / math.sqrt(fan_in)
    w = jax.random.uniform(kw, (fan_in, fan_out), jnp.float32, -bound, bound)
    b = jax.random.uniform(kb, (1, fan_out), jnp.float32, -bound, bound)
    return w, b


class TimeEmbeddingPallas:
    def __init__(self, key, T, d_model, dim, param_dtype=jnp.float32):
        assert d_model % 2 == 0
        self.T, self.d_model, self.dim = T, d_model, dim
        self.dim_pad = ((dim + 127) // 128) * 128            # lane-dense width

        self.table = make_sinusoidal_table(T, d_model)       # [T, d_model]
        k1, k2 = jax.random.split(key)
        self.w1, self.b1 = init_linear(k1, d_model, dim)     # f32 reference params
        self.w2, self.b2 = init_linear(k2, dim, dim)

        dp = self.dim_pad
        # Algebraic pre-fusion: table @ W1 collapses the embedding gather and
        # the first Linear into one [T, dim_pad] matrix.  Padded columns are
        # zero, so padded kernel outputs are exactly zero by construction.
        # (Recompute this if table / W1 ever change, e.g. after a train step.)
        w1_p = jnp.zeros((d_model, dp), jnp.float32).at[:, :dim].set(self.w1)
        self.fused_w1 = (self.table @ w1_p).astype(param_dtype)      # [T, dp]
        self.b1_p = jnp.zeros((1, dp), jnp.float32).at[:, :dim].set(self.b1)
        self.w2_p = jnp.zeros((dp, dp), jnp.float32).at[:dim, :dim] \
                       .set(self.w2).astype(param_dtype)
        self.b2_p = jnp.zeros((1, dp), jnp.float32).at[:, :dim].set(self.b2)

    def __call__(self, t):
        return time_embedding_forward(t, self.fused_w1, self.b1_p,
                                      self.w2_p, self.b2_p, self.dim)

    def reference(self, t):
        emb = jnp.take(self.table, t, axis=0)
        h = emb @ self.w1 + self.b1
        h = h * jax.nn.sigmoid(h)
        return h @ self.w2 + self.b2


if __name__ == "__main__":
    T, d_model, dim = 100, 32, 64
    B = 8

    key = jax.random.PRNGKey(0)
    kparam, kt = jax.random.split(key)
    t = jax.random.randint(kt, (B,), 0, T, dtype=jnp.int32)

    # Full-precision weights: matches the PyTorch forward tightly.
    mod = TimeEmbeddingPallas(kparam, T, d_model, dim, param_dtype=jnp.float32)
    out = jax.block_until_ready(mod(t))
    ref = mod.reference(t)
    assert out.shape == (B, dim)
    assert jnp.allclose(out, ref, atol=2e-3, rtol=2e-3), "f32 mismatch vs reference"

    # bf16 weight storage (MXU-native on v5e/v6e/v7x); accumulation stays f32.
    mod_bf16 = TimeEmbeddingPallas(kparam, T, d_model, dim, param_dtype=jnp.bfloat16)
    out_bf16 = jax.block_until_ready(mod_bf16(t))
    assert out_bf16.shape == (B, dim)
    assert jnp.allclose(out_bf16, ref, atol=6e-2, rtol=6e-2), "bf16 mismatch vs reference"

    print("KERNEL_OK")
</pallas_src>

<mosaic_0001>
module attributes {stable_mosaic.version = 11 : i64} {
  func.func @_time_embed_kernel(%arg0: i32, %arg1: memref<8x1xi32, #tpu.memory_space<vmem>>, %arg2: memref<100x128xf32, #tpu.memory_space<vmem>>, %arg3: memref<1x128xf32, #tpu.memory_space<vmem>>, %arg4: memref<128x128xf32, #tpu.memory_space<vmem>>, %arg5: memref<1x128xf32, #tpu.memory_space<vmem>>, %arg6: memref<8x128xf32, #tpu.memory_space<vmem>>) attributes {dimension_semantics = [#tpu.dimension_semantics<parallel>], iteration_bounds = array<i64: 1>, scalar_prefetch = 0 : i64, scratch_operands = 0 : i64, tpu.core_type = #tpu.core_type<tc>, window_params = [{transform_indices = @transform_0, window_bounds = array<i64: 8, 1>}, {pipeline_mode = #tpu.pipeline_mode<synchronous>, transform_indices = @transform_1, window_bounds = array<i64: 100, 128>}, {pipeline_mode = #tpu.pipeline_mode<synchronous>, transform_indices = @transform_2, window_bounds = array<i64: 1, 128>}, {pipeline_mode = #tpu.pipeline_mode<synchronous>, transform_indices = @transform_3, window_bounds = array<i64: 128, 128>}, {pipeline_mode = #tpu.pipeline_mode<synchronous>, transform_indices = @transform_4, window_bounds = array<i64: 1, 128>}, {transform_indices = @transform_5, window_bounds = array<i64: 8, 128>}]} {
    %c0 = arith.constant 0 : index
    %c0_0 = arith.constant 0 : index
    %0 = vector.load %arg1[%c0, %c0_0] : memref<8x1xi32, #tpu.memory_space<vmem>>, vector<8x1xi32>
    %1 = tpu.iota {dimensions = array<i32: 1>} : vector<8x100xi32>
    %2 = vector.broadcast %0 : vector<8x1xi32> to vector<8x100xi32>
    %3 = arith.cmpi eq, %1, %2 : vector<8x100xi32>
    %4 = arith.extui %3 : vector<8x100xi1> to vector<8x100xi32>
    %5 = arith.sitofp %4 : vector<8x100xi32> to vector<8x100xf32>
    %c0_1 = arith.constant 0 : index
    %c0_2 = arith.constant 0 : index
    %6 = vector.load %arg2[%c0_1, %c0_2] : memref<100x128xf32, #tpu.memory_space<vmem>>, vector<100x128xf32>
    %cst = arith.constant dense<0.000000e+00> : vector<8x128xf32>
    %7 = tpu.matmul %5, %6, %cst {dimension_numbers = #tpu.dot_dimension_numbers<[1], [0], [0], [1], [0, 0, 1, 1], [], []>} : vector<8x100xf32>, vector<100x128xf32>, vector<8x128xf32> -> vector<8x128xf32>
    %c0_3 = arith.constant 0 : index
    %c0_4 = arith.constant 0 : index
    %8 = vector.load %arg3[%c0_3, %c0_4] : memref<1x128xf32, #tpu.memory_space<vmem>>, vector<1x128xf32>
    %9 = vector.broadcast %8 : vector<1x128xf32> to vector<8x128xf32>
    %10 = arith.addf %7, %9 : vector<8x128xf32>
    %cst_5 = arith.constant 5.000000e-01 : f32
    %11 = vector.broadcast %cst_5 : f32 to vector<8x128xf32>
    %12 = arith.mulf %11, %10 : vector<8x128xf32>
    %13 = math.tanh %12 : vector<8x128xf32>
    %cst_6 = arith.constant 5.000000e-01 : f32
    %14 = vector.broadcast %cst_6 : f32 to vector<8x128xf32>
    %15 = arith.mulf %14, %13 : vector<8x128xf32>
    %cst_7 = arith.constant 5.000000e-01 : f32
    %16 = vector.broadcast %cst_7 : f32 to vector<8x128xf32>
    %17 = arith.addf %15, %16 : vector<8x128xf32>
    %18 = arith.mulf %10, %17 : vector<8x128xf32>
    %c0_8 = arith.constant 0 : index
    %c0_9 = arith.constant 0 : index
    %19 = vector.load %arg4[%c0_8, %c0_9] : memref<128x128xf32, #tpu.memory_space<vmem>>, vector<128x128xf32>
    %cst_10 = arith.constant dense<0.000000e+00> : vector<8x128xf32>
    %20 = tpu.matmul %18, %19, %cst_10 {dimension_numbers = #tpu.dot_dimension_numbers<[1], [0], [0], [1], [0, 0, 1, 1], [], []>} : vector<8x128xf32>, vector<128x128xf32>, vector<8x128xf32> -> vector<8x128xf32>
    %c0_11 = arith.constant 0 : index
    %c0_12 = arith.constant 0 : index
    %21 = vector.load %arg5[%c0_11, %c0_12] : memref<1x128xf32, #tpu.memory_space<vmem>>, vector<1x128xf32>
    %22 = vector.broadcast %21 : vector<1x128xf32> to vector<8x128xf32>
    %23 = arith.addf %20, %22 : vector<8x128xf32>
    %c0_13 = arith.constant 0 : index
    %c0_14 = arith.constant 0 : index
    %24 = vector.load %arg6[%c0_13, %c0_14] : memref<8x128xf32, #tpu.memory_space<vmem>>, vector<8x128xf32>
    tpu.vector_store %arg6[%c0_13, %c0_14], %23 {strides = array<i32>} : memref<8x128xf32, #tpu.memory_space<vmem>>, vector<8x128xf32>,
    return
  }
  func.func @transform_0(%arg0: i32) -> (i32, i32) {
    %c0_i32 = arith.constant 0 : i32
    %c0_i32_0 = arith.constant 0 : i32
    return %arg0, %c0_i32 : i32, i32
  }
  func.func @transform_1(%arg0: i32) -> (i32, i32) {
    %c0_i32 = arith.constant 0 : i32
    %c0_i32_0 = arith.constant 0 : i32
    %c0_i32_1 = arith.constant 0 : i32
    return %c0_i32, %c0_i32_0 : i32, i32
  }
  func.func @transform_2(%arg0: i32) -> (i32, i32) {
    %c0_i32 = arith.constant 0 : i32
    %c0_i32_0 = arith.constant 0 : i32
    %c0_i32_1 = arith.constant 0 : i32
    return %c0_i32, %c0_i32_0 : i32, i32
  }
  func.func @transform_3(%arg0: i32) -> (i32, i32) {
    %c0_i32 = arith.constant 0 : i32
    %c0_i32_0 = arith.constant 0 : i32
    %c0_i32_1 = arith.constant 0 : i32
    return %c0_i32, %c0_i32_0 : i32, i32
  }
  func.func @transform_4(%arg0: i32) -> (i32, i32) {
    %c0_i32 = arith.constant 0 : i32
    %c0_i32_0 = arith.constant 0 : i32
    %c0_i32_1 = arith.constant 0 : i32
    return %c0_i32, %c0_i32_0 : i32, i32
  }
  func.func @transform_5(%arg0: i32) -> (i32, i32) {
    %c0_i32 = arith.constant 0 : i32
    %c0_i32_0 = arith.constant 0 : i32
    return %arg0, %c0_i32 : i32, i32
  }
}

module attributes {stable_mosaic.version = 11 : i64} {
  func.func @_time_embed_kernel(%arg0: i32, %arg1: memref<8x1xi32, #tpu.memory_space<vmem>>, %arg2: memref<100x128xf32, #tpu.memory_space<vmem>>, %arg3: memref<1x128xf32, #tpu.memory_space<vmem>>, %arg4: memref<128x128xf32, #tpu.memory_space<vmem>>, %arg5: memref<1x128xf32, #tpu.memory_space<vmem>>, %arg6: memref<8x128xf32, #tpu.memory_space<vmem>>) attributes {dimension_semantics = [#tpu.dimension_semantics<parallel>], iteration_bounds = array<i64: 1>, scalar_prefetch = 0 : i64, scratch_operands = 0 : i64, tpu.core_type = #tpu.core_type<tc>, window_params = [{transform_indices = @transform_0, window_bounds = array<i64: 8, 1>}, {pipeline_mode = #tpu.pipeline_mode<synchronous>, transform_indices = @transform_1, window_bounds = array<i64: 100, 128>}, {pipeline_mode = #tpu.pipeline_mode<synchronous>, transform_indices = @transform_2, window_bounds = array<i64: 1, 128>}, {pipeline_mode = #tpu.pipeline_mode<synchronous>, transform_indices = @transform_3, window_bounds = array<i64: 128, 128>}, {pipeline_mode = #tpu.pipeline_mode<synchronous>, transform_indices = @transform_4, window_bounds = array<i64: 1, 128>}, {transform_indices = @transform_5, window_bounds = array<i64: 8, 128>}]} {
    %c0 = arith.constant 0 : index
    %c0_0 = arith.constant 0 : index
    %0 = vector.load %arg1[%c0, %c0_0] : memref<8x1xi32, #tpu.memory_space<vmem>>, vector<8x1xi32>
    %1 = tpu.iota {dimensions = array<i32: 1>} : vector<8x100xi32>
    %2 = vector.broadcast %0 : vector<8x1xi32> to vector<8x100xi32>
    %3 = arith.cmpi eq, %1, %2 : vector<8x100xi32>
    %4 = arith.extui %3 : vector<8x100xi1> to vector<8x100xi32>
    %5 = arith.sitofp %4 : vector<8x100xi32> to vector<8x100xf32>
    %c0_1 = arith.constant 0 : index
    %c0_2 = arith.constant 0 : index
    %6 = vector.load %arg2[%c0_1, %c0_2] : memref<100x128xf32, #tpu.memory_space<vmem>>, vector<100x128xf32>
    %cst = arith.constant dense<0.000000e+00> : vector<8x128xf32>
    %7 = tpu.matmul %5, %6, %cst {dimension_numbers = #tpu.dot_dimension_numbers<[1], [0], [0], [1], [0, 0, 1, 1], [], []>} : vector<8x100xf32>, vector<100x128xf32>, vector<8x128xf32> -> vector<8x128xf32>
    %c0_3 = arith.constant 0 : index
    %c0_4 = arith.constant 0 : index
    %8 = vector.load %arg3[%c0_3, %c0_4] : memref<1x128xf32, #tpu.memory_space<vmem>>, vector<1x128xf32>
    %9 = vector.broadcast %8 : vector<1x128xf32> to vector<8x128xf32>
    %10 = arith.addf %7, %9 : vector<8x128xf32>
    %cst_5 = arith.constant 5.000000e-01 : f32
    %11 = vector.broadcast %cst_5 : f32 to vector<8x128xf32>
    %12 = arith.mulf %11, %10 : vector<8x128xf32>
    %13 = math.tanh %12 : vector<8x128xf32>
    %cst_6 = arith.constant 5.000000e-01 : f32
    %14 = vector.broadcast %cst_6 : f32 to vector<8x128xf32>
    %15 = arith.mulf %14, %13 : vector<8x128xf32>
    %cst_7 = arith.constant 5.000000e-01 : f32
    %16 = vector.broadcast %cst_7 : f32 to vector<8x128xf32>
    %17 = arith.addf %15, %16 : vector<8x128xf32>
    %18 = arith.mulf %10, %17 : vector<8x128xf32>
    %c0_8 = arith.constant 0 : index
    %c0_9 = arith.constant 0 : index
    %19 = vector.load %arg4[%c0_8, %c0_9] : memref<128x128xf32, #tpu.memory_space<vmem>>, vector<128x128xf32>
    %cst_10 = arith.constant dense<0.000000e+00> : vector<8x128xf32>
    %20 = tpu.matmul %18, %19, %cst_10 {dimension_numbers = #tpu.dot_dimension_numbers<[1], [0], [0], [1], [0, 0, 1, 1], [], []>} : vector<8x128xf32>, vector<128x128xf32>, vector<8x128xf32> -> vector<8x128xf32>
    %c0_11 = arith.constant 0 : index
    %c0_12 = arith.constant 0 : index
    %21 = vector.load %arg5[%c0_11, %c0_12] : memref<1x128xf32, #tpu.memory_space<vmem>>, vector<1x128xf32>
    %22 = vector.broadcast %21 : vector<1x128xf32> to vector<8x128xf32>
    %23 = arith.addf %20, %22 : vector<8x128xf32>
    %c0_13 = arith.constant 0 : index
    %c0_14 = arith.constant 0 : index
    %24 = vector.load %arg6[%c0_13, %c0_14] : memref<8x128xf32, #tpu.memory_space<vmem>>, vector<8x128xf32>
    tpu.vector_store %arg6[%c0_13, %c0_14], %23 {strides = array<i32>} : memref<8x128xf32, #tpu.memory_space<vmem>>, vector<8x128xf32>,
    return
  }
  func.func @transform_0(%arg0: i32) -> (i32, i32) {
    %c0_i32 = arith.constant 0 : i32
    %c0_i32_0 = arith.constant 0 : i32
    return %arg0, %c0_i32 : i32, i32
  }
  func.func @transform_1(%arg0: i32) -> (i32, i32) {
    %c0_i32 = arith.constant 0 : i32
    %c0_i32_0 = arith.constant 0 : i32
    %c0_i32_1 = arith.constant 0 : i32
    return %c0_i32, %c0_i32_0 : i32, i32
  }
  func.func @transform_2(%arg0: i32) -> (i32, i32) {
    %c0_i32 = arith.constant 0 : i32
    %c0_i32_0 = arith.constant 0 : i32
    %c0_i32_1 = arith.constant 0 : i32
    return %c0_i32, %c0_i32_0 : i32, i32
  }
  func.func @transform_3(%arg0: i32) -> (i32, i32) {
    %c0_i32 = arith.constant 0 : i32
    %c0_i32_0 = arith.constant 0 : i32
    %c0_i32_1 = arith.constant 0 : i32
    return %c0_i32, %c0_i32_0 : i32, i32
  }
  func.func @transform_4(%arg0: i32) -> (i32, i32) {
    %c0_i32 = arith.constant 0 : i32
    %c0_i32_0 = arith.constant 0 : i32
    %c0_i32_1 = arith.constant 0 : i32
    return %c0_i32, %c0_i32_0 : i32, i32
  }
  func.func @transform_5(%arg0: i32) -> (i32, i32) {
    %c0_i32 = arith.constant 0 : i32
    %c0_i32_0 = arith.constant 0 : i32
    return %arg0, %c0_i32 : i32, i32
  }
}

</mosaic_0001>

<bundles_post_ra>
// kernel: tpu_custom_call.1
= control target key start
LH: loop header
LB: loop body
LE: loop exit
PB: predicated region body
PF: predicated region fallthrough
CT: control target
= control target key end

     0   :  { %10 = vsyncpa [#allocation3], 0  ;;  %s536_s0 = inlined_call_operand.vmem [shape: s32[8,1], index: 0, kind: input, shape index: {}]   ;;  %s537_s1 = inlined_call_operand.hbm [shape: f32[100,128], index: 1, kind: input, shape index: {}]   ;;  %s538_s2 = inlined_call_operand.vmem [shape: f32[1,128], index: 2, kind: input, shape index: {}]   ;;  %s539_s3 = inlined_call_operand.hbm [shape: f32[128,128], index: 3, kind: input, shape index: {}]   ;;  %s540_s4 = inlined_call_operand.vmem [shape: f32[1,128], index: 4, kind: input, shape index: {}]   ;;  %s541_s5 = inlined_call_operand.hbm [shape: f32[8,128], index: 5, kind: output, shape index: {}]  }
   0x1   :  { %11 = vsyncpa [#allocation6], 0 }
   0x2   :  { %12 = vsyncpa [#allocation4], 0  ;;  %s448_s18 = smov [#allocation2]  }
   0x3   :  { %s20_s19 = sshll.u32 %s448_s18, 4  ;;  %s21_s19 = int_to_ptr.vmem [resolvable:$true] %s20_s19 }
   0x4   :  { %s390_s20 = scalar_lea.vmem %s21_s19, 1664  ;;  %p395_p1 = scmp.lt.s32.totalorder %s21_s19, %s21_s19 }
   0x5   :  { %p391_p0 = scmp.ne.s32.totalorder %s21_s19, %s390_s20  ;;  %p396_p2 = scmp.lt.s32.totalorder %s390_s20, %s390_s20 }
   0x7   :  { %p397_p3 = por %p396_p2, %p395_p1 }
   0x9   :  { %p398_p4 = pnand %p397_p3, %p391_p0 }
   0xb   :  { %401 = shalt.err (!%p398_p4)
}
   0xc   :  { %s449_s21 = smov 128   ;;  %s450_s22 = smov 8  }
   0xd   :  { %26 = dma.hbm_to_vmem [thread:$0]  %s537_s1, 1664, %s21_s19, [#allocation3], %s449_s21, %s449_s21, %s450_s22  }
   0xe   :  { %s451_s25 = smov [#allocation5]  }
   0xf   :  { %s34_s26 = sshll.u32 %s451_s25, 4  ;;  %s35_s26 = int_to_ptr.vmem [resolvable:$true] %s34_s26 }
  0x10   :  { %s410_s27 = scalar_lea.vmem %s35_s26, 2048  ;;  %p415_p6 = scmp.lt.s32.totalorder %s35_s26, %s35_s26 }
  0x11   :  { %p411_p5 = scmp.ne.s32.totalorder %s35_s26, %s410_s27  ;;  %p416_p7 = scmp.lt.s32.totalorder %s410_s27, %s410_s27 }
  0x13   :  { %p417_p8 = por %p416_p7, %p415_p6 }
  0x15   :  { %p418_p9 = pnand %p417_p8, %p411_p5 }
  0x17   :  { %421 = shalt.err (!%p418_p9)
}
  0x18   :  { %40 = dma.hbm_to_vmem [thread:$0]  %s539_s3, 2048, %s35_s26, [#allocation6], %s449_s21, %s449_s21, %s450_s22  }
  0x19   :  { %442 = dma.done.wait [#allocation3], 1664  }
  0x1a   :  { %443 = vsyncadd [#allocation3], 4294965632 }
  0x1b   :  { %444 = dma.done.wait [#allocation6], 2048  }
  0x1c   :  { %445 = vsyncadd [#allocation6], 4294965248  ;;  %v452_v0 = vmov 0   ;;  %v453_v1 = vmov 0.0   ;;  %vm82_vm0 = vcmask 1043456   ;;  %vm454_vm1 = vmmov 0  }
  0x1d   :  { %379 = vset.pattern.permute.xlu0 %v452_v0  ;;  %307 = vmatprep.subr.mxu0 %v453_v1  ;;  %v49_v2 = vld [vmem:[%s536_s0] sm:$0xff]  ;;  %v69_v4 = vld [vmem:[#allocation2 + $0x58] sm:$0xff]  ;;  %v68_v5 = vld [vmem:[#allocation2 + $0x50] sm:$0xff]  ;;  %v50_v19 = vlaneseq  ;;  %vm78_vm2 = vcmask 818176   ;;  %s455_s8 = smov [#allocation7]  }
  0x1e   :  { %336 = vmatprep.subr.mxu1 %v453_v1  ;;  %333 = vmatprep.mubr.msk.f32.mxu0 %vm454_vm1, %v453_v1  ;;  %v70_v3 = vld [vmem:[#allocation2 + $0x60] sm:$0xf]  ;;  %v67_v6 = vld [vmem:[#allocation2 + $0x48] sm:$0xff]  ;;  %v175_v8 = vld [vmem:[#allocation5 + $0x70] sm:$0xff]  ;;  %s261_s9 = sshll.u32 %s455_s8, 4  ;;  %s262_s9 = int_to_ptr.vmem [resolvable:$true] %s261_s9 }
  0x1f   :  { %368 = vmatprep.mubr.msk.f32.mxu1 %vm454_vm1, %v453_v1  ;;  %53 = vperm.xlu0 %379, %v49_v2   ;;  %v176_v7 = vld [vmem:[#allocation5 + $0x78] sm:$0xff]  ;;  %v174_v10 = vld [vmem:[#allocation5 + $0x68] sm:$0xff]  ;;  %v65_v11 = vld [vmem:[#allocation2 + $0x38] sm:$0xff]  ;;  %v51_v20 = vand.u32 127, %v50_v19  ;;  %p427_p11 = scmp.lt.s32.totalorder %s262_s9, %s262_s9 }
  0x20   :  { %308 = vmatpush3.msk.msra.mxu0 %vm82_vm0, %v70_v3  ;;  %337 = vmatpush3.msra.mxu1 %v176_v7  ;;  %v66_v9 = vld [vmem:[#allocation2 + $0x40] sm:$0xff]  ;;  %v64_v12 = vld [vmem:[#allocation2 + $0x30] sm:$0xff]  ;;  %v63_v13 = vld [vmem:[#allocation2 + $0x28] sm:$0xff] }
  0x21   :  { %309 = vmatprep.subr.mxu0 %v453_v1  ;;  %338 = vmatprep.subr.mxu1 %v453_v1  ;;  %v62_v14 = vld [vmem:[#allocation2 + $0x20] sm:$0xff]  ;;  %v61_v15 = vld [vmem:[#allocation2 + $0x18] sm:$0xff]  ;;  %v60_v16 = vld [vmem:[#allocation2 + $0x10] sm:$0xff] }
  0x22   :  { %310 = vmatpush3.msra.mxu0 %v69_v4  ;;  %339 = vmatpush3.msra.mxu1 %v175_v8  ;;  %v59_v17 = vld [vmem:[#allocation2 + $0x8] sm:$0xff]  ;;  %v58_v18 = vld [vmem:[#allocation2] sm:$0xff]  ;;  %v171_v25 = vld [vmem:[#allocation5 + $0x50] sm:$0xff] }
  0x23   :  { %311 = vmatprep.subr.mxu0 %v453_v1  ;;  %340 = vmatprep.subr.mxu1 %v453_v1  ;;  %v173_v23 = vld [vmem:[#allocation5 + $0x60] sm:$0xff]  ;;  %v172_v24 = vld [vmem:[#allocation5 + $0x58] sm:$0xff]  ;;  %v170_v26 = vld [vmem:[#allocation5 + $0x48] sm:$0xff] }
  0x24   :  { %312 = vmatpush3.msra.mxu0 %v68_v5  ;;  %341 = vmatpush3.msra.mxu1 %v174_v10  ;;  %v169_v27 = vld [vmem:[#allocation5 + $0x40] sm:$0xff]  ;;  %v168_v28 = vld [vmem:[#allocation5 + $0x38] sm:$0xff]  ;;  %v167_v29 = vld [vmem:[#allocation5 + $0x30] sm:$0xff] }
  0x25   :  { %313 = vmatprep.subr.mxu0 %v453_v1  ;;  %342 = vmatprep.subr.mxu1 %v453_v1  ;;  %v166_v30 = vld [vmem:[#allocation5 + $0x28] sm:$0xff]  ;;  %v165_v31 = vld [vmem:[#allocation5 + $0x20] sm:$0xff]  ;;  %v164_v32 = vld [vmem:[#allocation5 + $0x18] sm:$0xff] }
  0x26   :  { %314 = vmatpush3.msra.mxu0 %v67_v6  ;;  %343 = vmatpush3.msra.mxu1 %v173_v23  ;;  %v163_v33 = vld [vmem:[#allocation5 + $0x10] sm:$0xff]  ;;  %v162_v34 = vld [vmem:[#allocation5 + $0x8] sm:$0xff]  ;;  %v161_v35 = vld [vmem:[#allocation5] sm:$0xff] }
  0x27   :  { %315 = vmatprep.subr.mxu0 %v453_v1  ;;  %344 = vmatprep.subr.mxu1 %v453_v1  ;;  %v272_v36 = vld [vmem:[%s538_s2] ss:$0 sm:$0xff]  ;;  %s422_s2 = scalar_lea.vmem %s262_s9, 128 }
  0x28   :  { %316 = vmatpush3.msra.mxu0 %v66_v9  ;;  %345 = vmatpush3.msra.mxu1 %v172_v24  ;;  %v275_v45 = vld [vmem:[%s540_s4] ss:$0 sm:$0xff]  ;;  %p423_p10 = scmp.ne.s32.totalorder %s262_s9, %s422_s2  ;;  %p428_p12 = scmp.lt.s32.totalorder %s422_s2, %s422_s2 }
  0x29   :  { %317 = vmatprep.subr.mxu0 %v453_v1  ;;  %346 = vmatprep.subr.mxu1 %v453_v1 }
  0x2a   :  { %318 = vmatpush3.msra.mxu0 %v65_v11  ;;  %347 = vmatpush3.msra.mxu1 %v171_v25  ;;  %p429_p13 = por %p428_p12, %p427_p11 }
  0x2b   :  { %319 = vmatprep.subr.mxu0 %v453_v1  ;;  %348 = vmatprep.subr.mxu1 %v453_v1 }
  0x2c   :  { %320 = vmatpush3.msra.mxu0 %v64_v12  ;;  %349 = vmatpush3.msra.mxu1 %v170_v26  ;;  %p430_p0 = pnand %p429_p13, %p423_p10 }
  0x2d   :  { %321 = vmatprep.subr.mxu0 %v453_v1  ;;  %350 = vmatprep.subr.mxu1 %v453_v1 }
  0x2e   :  { %322 = vmatpush3.msra.mxu0 %v63_v13  ;;  %351 = vmatpush3.msra.mxu1 %v169_v27 }
  0x2f   :  { %323 = vmatprep.subr.mxu0 %v453_v1  ;;  %352 = vmatprep.subr.mxu1 %v453_v1 }
  0x30   :  { %324 = vmatpush3.msra.mxu0 %v62_v14  ;;  %353 = vmatpush3.msra.mxu1 %v168_v28 }
  0x31   :  { %325 = vmatprep.subr.mxu0 %v453_v1  ;;  %354 = vmatprep.subr.mxu1 %v453_v1 }
  0x32   :  { %326 = vmatpush3.msra.mxu0 %v61_v15  ;;  %355 = vmatpush3.msra.mxu1 %v167_v29 }
  0x33   :  { %327 = vmatprep.subr.mxu0 %v453_v1  ;;  %356 = vmatprep.subr.mxu1 %v453_v1 }
  0x34   :  { %328 = vmatpush3.msra.mxu0 %v60_v16  ;;  %357 = vmatpush3.msra.mxu1 %v166_v30 }
  0x35   :  { %329 = vmatprep.subr.mxu0 %v453_v1  ;;  %358 = vmatprep.subr.mxu1 %v453_v1 }
  0x36   :  { %330 = vmatpush3.msra.mxu0 %v59_v17  ;;  %359 = vmatpush3.msra.mxu1 %v165_v31 }
  0x37   :  { %331 = vmatprep.subr.mxu0 %v453_v1  ;;  %360 = vmatprep.subr.mxu1 %v453_v1 }
  0x38   :  { %332 = vmatpush3.msra.mxu0 %v58_v18  ;;  %361 = vmatpush3.msra.mxu1 %v164_v32 }
  0x39   :  { %362 = vmatprep.subr.mxu1 %v453_v1 }
  0x3a   :  { %363 = vmatpush3.msra.mxu1 %v163_v33 }
  0x3b   :  { %364 = vmatprep.subr.mxu1 %v453_v1 }
  0x3c   :  { %365 = vmatpush3.msra.mxu1 %v162_v34 }
  0x3d   :  { %366 = vmatprep.subr.mxu1 %v453_v1 }
  0x3e   :  { %367 = vmatpush3.msra.mxu1 %v161_v35 }
  0x9a   :  { %v54_v21 = vpop.permute.xlu0 %53 }
  0x9b   :  { %vm55_vm3 = vcmp.eq.s32.totalorder %v51_v20, %v54_v21 }
  0x9c   :  { %v271_v22 = vsel %vm55_vm3, 1.0, %v453_v1 }
  0x9d   :  { %334 = vmatmul.mubr.msk.f32.vlgmr.msra.gmra.mxu0 %vm78_vm2, %v271_v22 }
 0x15d   :  { %v152_v37 = vpop.f32.mrf.mxu0 }
 0x15e   :  { %v153_v38 = vadd.f32 %v272_v36, %v152_v37 }
 0x15f   :  { %v335_v39 = vpop.f32.mrf.mxu0 }
 0x160   :  { %v156_v40 = vmul.f32 0.5, %v153_v38 }
 0x162   :  { %380 = vtanh.f32 %v156_v40 }
 0x16f   :  { %v381_v41 = vpop.eup %380 }
 0x170   :  { %v158_v42 = vmul.f32 0.5, %v381_v41 }
 0x172   :  { %v159_v43 = vadd.f32 0.5, %v158_v42 }
 0x174   :  { %v160_v44 = vmul.f32 %v159_v43, %v153_v38 }
 0x176   :  { %369 = vmatmul.mubr.f32.vlgmr.msra.gmra.mxu1 %v160_v44 }
 0x236   :  { %v250_v46 = vpop.f32.mrf.mxu1 }
 0x237   :  { %v251_v47 = vadd.f32 %v275_v45, %v250_v46 }
 0x238   :  { %v370_v48 = vpop.f32.mrf.mxu1 }
 0x239   :  { %254 = vst [vmem:[#allocation7] sm:$0xff] %v251_v47 }
 0x23a   :  { %433 = shalt.err (!%p430_p0)
}
 0x23b   :  { %264 = dma.vmem_to_hbm [thread:$0]  %s262_s9, 128, %s541_s5, [#allocation4]  }
 0x23c   :  { %446 = dma.done.wait [#allocation4], 128  }
 0x23d   :  { %447 = vsyncadd [#allocation4], 4294967168 }
 0x23e   :  { %268 = vsyncpa [#allocation3], 1 }
 0x23f   :  { %269 = vsyncpa [#allocation6], 1 }
 0x240   :  { %270 = vsyncpa [#allocation4], 1 }

// kernel: tpu_custom_call.1
= control target key start
LH: loop header
LB: loop body
LE: loop exit
PB: predicated region body
PF: predicated region fallthrough
CT: control target
= control target key end

     0   :  { %10 = vsyncpa [#allocation3], 0  ;;  %s536_s0 = inlined_call_operand.vmem [shape: s32[8,1], index: 0, kind: input, shape index: {}]   ;;  %s537_s1 = inlined_call_operand.hbm [shape: f32[100,128], index: 1, kind: input, shape index: {}]   ;;  %s538_s2 = inlined_call_operand.vmem [shape: f32[1,128], index: 2, kind: input, shape index: {}]   ;;  %s539_s3 = inlined_call_operand.hbm [shape: f32[128,128], index: 3, kind: input, shape index: {}]   ;;  %s540_s4 = inlined_call_operand.vmem [shape: f32[1,128], index: 4, kind: input, shape index: {}]   ;;  %s541_s5 = inlined_call_operand.hbm [shape: f32[8,128], index: 5, kind: output, shape index: {}]  }
   0x1   :  { %11 = vsyncpa [#allocation6], 0 }
   0x2   :  { %12 = vsyncpa [#allocation4], 0  ;;  %s448_s18 = smov [#allocation2]  }
   0x3   :  { %s20_s19 = sshll.u32 %s448_s18, 4  ;;  %s21_s19 = int_to_ptr.vmem [resolvable:$true] %s20_s19 }
   0x4   :  { %s390_s20 = scalar_lea.vmem %s21_s19, 1664  ;;  %p395_p1 = scmp.lt.s32.totalorder %s21_s19, %s21_s19 }
   0x5   :  { %p391_p0 = scmp.ne.s32.totalorder %s21_s19, %s390_s20  ;;  %p396_p2 = scmp.lt.s32.totalorder %s390_s20, %s390_s20 }
   0x7   :  { %p397_p3 = por %p396_p2, %p395_p1 }
   0x9   :  { %p398_p4 = pnand %p397_p3, %p391_p0 }
   0xb   :  { %401 = shalt.err (!%p398_p4)
}
   0xc   :  { %s449_s21 = smov 128   ;;  %s450_s22 = smov 8  }
   0xd   :  { %26 = dma.hbm_to_vmem [thread:$0]  %s537_s1, 1664, %s21_s19, [#allocation3], %s449_s21, %s449_s21, %s450_s22  }
   0xe   :  { %s451_s25 = smov [#allocation5]  }
   0xf   :  { %s34_s26 = sshll.u32 %s451_s25, 4  ;;  %s35_s26 = int_to_ptr.vmem [resolvable:$true] %s34_s26 }
  0x10   :  { %s410_s27 = scalar_lea.vmem %s35_s26, 2048  ;;  %p415_p6 = scmp.lt.s32.totalorder %s35_s26, %s35_s26 }
  0x11   :  { %p411_p5 = scmp.ne.s32.totalorder %s35_s26, %s410_s27  ;;  %p416_p7 = scmp.lt.s32.totalorder %s410_s27, %s410_s27 }
  0x13   :  { %p417_p8 = por %p416_p7, %p415_p6 }
  0x15   :  { %p418_p9 = pnand %p417_p8, %p411_p5 }
  0x17   :  { %421 = shalt.err (!%p418_p9)
}
  0x18   :  { %40 = dma.hbm_to_vmem [thread:$0]  %s539_s3, 2048, %s35_s26, [#allocation6], %s449_s21, %s449_s21, %s450_s22  }
  0x19   :  { %442 = dma.done.wait [#allocation3], 1664  }
  0x1a   :  { %443 = vsyncadd [#allocation3], 4294965632 }
  0x1b   :  { %444 = dma.done.wait [#allocation6], 2048  }
  0x1c   :  { %445 = vsyncadd [#allocation6], 4294965248  ;;  %v452_v0 = vmov 0   ;;  %v453_v1 = vmov 0.0   ;;  %vm82_vm0 = vcmask 1043456   ;;  %vm454_vm1 = vmmov 0  }
  0x1d   :  { %379 = vset.pattern.permute.xlu0 %v452_v0  ;;  %307 = vmatprep.subr.mxu0 %v453_v1  ;;  %v49_v2 = vld [vmem:[%s536_s0] sm:$0xff]  ;;  %v69_v4 = vld [vmem:[#allocation2 + $0x58] sm:$0xff]  ;;  %v68_v5 = vld [vmem:[#allocation2 + $0x50] sm:$0xff]  ;;  %v50_v19 = vlaneseq  ;;  %vm78_vm2 = vcmask 818176   ;;  %s455_s8 = smov [#allocation7]  }
  0x1e   :  { %336 = vmatprep.subr.mxu1 %v453_v1  ;;  %333 = vmatprep.mubr.msk.f32.mxu0 %vm454_vm1, %v453_v1  ;;  %v70_v3 = vld [vmem:[#allocation2 + $0x60] sm:$0xf]  ;;  %v67_v6 = vld [vmem:[#allocation2 + $0x48] sm:$0xff]  ;;  %v175_v8 = vld [vmem:[#allocation5 + $0x70] sm:$0xff]  ;;  %s261_s9 = sshll.u32 %s455_s8, 4  ;;  %s262_s9 = int_to_ptr.vmem [resolvable:$true] %s261_s9 }
  0x1f   :  { %368 = vmatprep.mubr.msk.f32.mxu1 %vm454_vm1, %v453_v1  ;;  %53 = vperm.xlu0 %379, %v49_v2   ;;  %v176_v7 = vld [vmem:[#allocation5 + $0x78] sm:$0xff]  ;;  %v174_v10 = vld [vmem:[#allocation5 + $0x68] sm:$0xff]  ;;  %v65_v11 = vld [vmem:[#allocation2 + $0x38] sm:$0xff]  ;;  %v51_v20 = vand.u32 127, %v50_v19  ;;  %p427_p11 = scmp.lt.s32.totalorder %s262_s9, %s262_s9 }
  0x20   :  { %308 = vmatpush3.msk.msra.mxu0 %vm82_vm0, %v70_v3  ;;  %337 = vmatpush3.msra.mxu1 %v176_v7  ;;  %v66_v9 = vld [vmem:[#allocation2 + $0x40] sm:$0xff]  ;;  %v64_v12 = vld [vmem:[#allocation2 + $0x30] sm:$0xff]  ;;  %v63_v13 = vld [vmem:[#allocation2 + $0x28] sm:$0xff] }
  0x21   :  { %309 = vmatprep.subr.mxu0 %v453_v1  ;;  %338 = vmatprep.subr.mxu1 %v453_v1  ;;  %v62_v14 = vld [vmem:[#allocation2 + $0x20] sm:$0xff]  ;;  %v61_v15 = vld [vmem:[#allocation2 + $0x18] sm:$0xff]  ;;  %v60_v16 = vld [vmem:[#allocation2 + $0x10] sm:$0xff] }
  0x22   :  { %310 = vmatpush3.msra.mxu0 %v69_v4  ;;  %339 = vmatpush3.msra.mxu1 %v175_v8  ;;  %v59_v17 = vld [vmem:[#allocation2 + $0x8] sm:$0xff]  ;;  %v58_v18 = vld [vmem:[#allocation2] sm:$0xff]  ;;  %v171_v25 = vld [vmem:[#allocation5 + $0x50] sm:$0xff] }
  0x23   :  { %311 = vmatprep.subr.mxu0 %v453_v1  ;;  %340 = vmatprep.subr.mxu1 %v453_v1  ;;  %v173_v23 = vld [vmem:[#allocation5 + $0x60] sm:$0xff]  ;;  %v172_v24 = vld [vmem:[#allocation5 + $0x58] sm:$0xff]  ;;  %v170_v26 = vld [vmem:[#allocation5 + $0x48] sm:$0xff] }
  0x24   :  { %312 = vmatpush3.msra.mxu0 %v68_v5  ;;  %341 = vmatpush3.msra.mxu1 %v174_v10  ;;  %v169_v27 = vld [vmem:[#allocation5 + $0x40] sm:$0xff]  ;;  %v168_v28 = vld [vmem:[#allocation5 + $0x38] sm:$0xff]  ;;  %v167_v29 = vld [vmem:[#allocation5 + $0x30] sm:$0xff] }
  0x25   :  { %313 = vmatprep.subr.mxu0 %v453_v1  ;;  %342 = vmatprep.subr.mxu1 %v453_v1  ;;  %v166_v30 = vld [vmem:[#allocation5 + $0x28] sm:$0xff]  ;;  %v165_v31 = vld [vmem:[#allocation5 + $0x20] sm:$0xff]  ;;  %v164_v32 = vld [vmem:[#allocation5 + $0x18] sm:$0xff] }
  0x26   :  { %314 = vmatpush3.msra.mxu0 %v67_v6  ;;  %343 = vmatpush3.msra.mxu1 %v173_v23  ;;  %v163_v33 = vld [vmem:[#allocation5 + $0x10] sm:$0xff]  ;;  %v162_v34 = vld [vmem:[#allocation5 + $0x8] sm:$0xff]  ;;  %v161_v35 = vld [vmem:[#allocation5] sm:$0xff] }
  0x27   :  { %315 = vmatprep.subr.mxu0 %v453_v1  ;;  %344 = vmatprep.subr.mxu1 %v453_v1  ;;  %v272_v36 = vld [vmem:[%s538_s2] ss:$0 sm:$0xff]  ;;  %s422_s2 = scalar_lea.vmem %s262_s9, 128 }
  0x28   :  { %316 = vmatpush3.msra.mxu0 %v66_v9  ;;  %345 = vmatpush3.msra.mxu1 %v172_v24  ;;  %v275_v45 = vld [vmem:[%s540_s4] ss:$0 sm:$0xff]  ;;  %p423_p10 = scmp.ne.s32.totalorder %s262_s9, %s422_s2  ;;  %p428_p12 = scmp.lt.s32.totalorder %s422_s2, %s422_s2 }
  0x29   :  { %317 = vmatprep.subr.mxu0 %v453_v1  ;;  %346 = vmatprep.subr.mxu1 %v453_v1 }
  0x2a   :  { %318 = vmatpush3.msra.mxu0 %v65_v11  ;;  %347 = vmatpush3.msra.mxu1 %v171_v25  ;;  %p429_p13 = por %p428_p12, %p427_p11 }
  0x2b   :  { %319 = vmatprep.subr.mxu0 %v453_v1  ;;  %348 = vmatprep.subr.mxu1 %v453_v1 }
  0x2c   :  { %320 = vmatpush3.msra.mxu0 %v64_v12  ;;  %349 = vmatpush3.msra.mxu1 %v170_v26  ;;  %p430_p0 = pnand %p429_p13, %p423_p10 }
  0x2d   :  { %321 = vmatprep.subr.mxu0 %v453_v1  ;;  %350 = vmatprep.subr.mxu1 %v453_v1 }
  0x2e   :  { %322 = vmatpush3.msra.mxu0 %v63_v13  ;;  %351 = vmatpush3.msra.mxu1 %v169_v27 }
  0x2f   :  { %323 = vmatprep.subr.mxu0 %v453_v1  ;;  %352 = vmatprep.subr.mxu1 %v453_v1 }
  0x30   :  { %324 = vmatpush3.msra.mxu0 %v62_v14  ;;  %353 = vmatpush3.msra.mxu1 %v168_v28 }
  0x31   :  { %325 = vmatprep.subr.mxu0 %v453_v1  ;;  %354 = vmatprep.subr.mxu1 %v453_v1 }
  0x32   :  { %326 = vmatpush3.msra.mxu0 %v61_v15  ;;  %355 = vmatpush3.msra.mxu1 %v167_v29 }
  0x33   :  { %327 = vmatprep.subr.mxu0 %v453_v1  ;;  %356 = vmatprep.subr.mxu1 %v453_v1 }
  0x34   :  { %328 = vmatpush3.msra.mxu0 %v60_v16  ;;  %357 = vmatpush3.msra.mxu1 %v166_v30 }
  0x35   :  { %329 = vmatprep.subr.mxu0 %v453_v1  ;;  %358 = vmatprep.subr.mxu1 %v453_v1 }
  0x36   :  { %330 = vmatpush3.msra.mxu0 %v59_v17  ;;  %359 = vmatpush3.msra.mxu1 %v165_v31 }
  0x37   :  { %331 = vmatprep.subr.mxu0 %v453_v1  ;;  %360 = vmatprep.subr.mxu1 %v453_v1 }
  0x38   :  { %332 = vmatpush3.msra.mxu0 %v58_v18  ;;  %361 = vmatpush3.msra.mxu1 %v164_v32 }
  0x39   :  { %362 = vmatprep.subr.mxu1 %v453_v1 }
  0x3a   :  { %363 = vmatpush3.msra.mxu1 %v163_v33 }
  0x3b   :  { %364 = vmatprep.subr.mxu1 %v453_v1 }
  0x3c   :  { %365 = vmatpush3.msra.mxu1 %v162_v34 }
  0x3d   :  { %366 = vmatprep.subr.mxu1 %v453_v1 }
  0x3e   :  { %367 = vmatpush3.msra.mxu1 %v161_v35 }
  0x9a   :  { %v54_v21 = vpop.permute.xlu0 %53 }
  0x9b   :  { %vm55_vm3 = vcmp.eq.s32.totalorder %v51_v20, %v54_v21 }
  0x9c   :  { %v271_v22 = vsel %vm55_vm3, 1.0, %v453_v1 }
  0x9d   :  { %334 = vmatmul.mubr.msk.f32.vlgmr.msra.gmra.mxu0 %vm78_vm2, %v271_v22 }
 0x15d   :  { %v152_v37 = vpop.f32.mrf.mxu0 }
 0x15e   :  { %v153_v38 = vadd.f32 %v272_v36, %v152_v37 }
 0x15f   :  { %v335_v39 = vpop.f32.mrf.mxu0 }
 0x160   :  { %v156_v40 = vmul.f32 0.5, %v153_v38 }
 0x162   :  { %380 = vtanh.f32 %v156_v40 }
 0x16f   :  { %v381_v41 = vpop.eup %380 }
 0x170   :  { %v158_v42 = vmul.f32 0.5, %v381_v41 }
 0x172   :  { %v159_v43 = vadd.f32 0.5, %v158_v42 }
 0x174   :  { %v160_v44 = vmul.f32 %v159_v43, %v153_v38 }
 0x176   :  { %369 = vmatmul.mubr.f32.vlgmr.msra.gmra.mxu1 %v160_v44 }
 0x236   :  { %v250_v46 = vpop.f32.mrf.mxu1 }
 0x237   :  { %v251_v47 = vadd.f32 %v275_v45, %v250_v46 }
 0x238   :  { %v370_v48 = vpop.f32.mrf.mxu1 }
 0x239   :  { %254 = vst [vmem:[#allocation7] sm:$0xff] %v251_v47 }
 0x23a   :  { %433 = shalt.err (!%p430_p0)
}
 0x23b   :  { %264 = dma.vmem_to_hbm [thread:$0]  %s262_s9, 128, %s541_s5, [#allocation4]  }
 0x23c   :  { %446 = dma.done.wait [#allocation4], 128  }
 0x23d   :  { %447 = vsyncadd [#allocation4], 4294967168 }
 0x23e   :  { %268 = vsyncpa [#allocation3], 1 }
 0x23f   :  { %269 = vsyncpa [#allocation6], 1 }
 0x240   :  { %270 = vsyncpa [#allocation4], 1 }

</bundles_post_ra>
